<compile_context>
chip_gen: v6e
topology: v6e:2x2x1
jax: 0.10.0
libtpu: 0.0.40
codegen_flags: <defaults>
</compile_context>

<pallas_src>
import functools

import jax
import jax.numpy as jnp
import numpy as np
from jax.experimental import pallas as pl
from jax.experimental.pallas import tpu as pltpu

# ---- static module configuration (matches CrossAttention defaults) ----
DIM = 32
CONTEXT_DIM = 32            # context_dim=None -> dim
HEADS = 8
DIM_HEAD = 4
INNER = HEADS * DIM_HEAD    # 32
SCALE = DIM_HEAD ** -0.5
EPS = 1e-5                  # float32 epsilon used by the module's LayerNorm
NEG_BIG = -1e30             # finite "minus infinity" (safer than -inf with exp / approx recip)
DEN_FLOOR = 1e-30           # floor on the softmax denominator (masked segments sum to 0)

# The slab packing below assumes every weight block is 32 columns wide.
assert DIM == INNER == CONTEXT_DIM


def _round8(v):
    return -(-v // 8) * 8


def _layout(batch, n_q, n_ctx):
    """Static layout numbers shared by prepare() and the wrapper."""
    pw = max(16, int(pl.next_power_of_2(n_ctx + 1)))   # per-head key width (null + keys + pad)
    lanes = HEADS * pw                                  # key lanes per batch (128 for defaults)
    kl = batch * lanes                                  # total key lanes (256 for B=2)
    off_rep = 0
    off_hm = _round8(batch * n_ctx)
    off_nk = off_hm + INNER
    off_nv = off_nk + INNER
    off_col = off_nv + INNER
    off_bias = off_col + _round8(batch * HEADS)
    rows = off_bias + _round8(batch * n_q)
    return dict(pw=pw, lanes=lanes, kl=kl, off_rep=off_rep, off_hm=off_hm,
                off_nk=off_nk, off_nv=off_nv, off_col=off_col, off_bias=off_bias,
                rows=rows)


# ----------------------------------------------------------------------------
# One-time host-side parameter / constant preparation (outside the hot path).
# ----------------------------------------------------------------------------
def prepare(params, batch, n_q, n_ctx):
    lay = _layout(batch, n_q, n_ctx)
    pw, kl = lay["pw"], lay["kl"]

    wq = np.asarray(params["wq"], np.float32)                  # (DIM, INNER)   = to_q.weight.T
    wkv = np.asarray(params["wkv"], np.float32)                # (DIM, 2*INNER) = to_kv.weight.T
    wout = np.asarray(params["wout"], np.float32)              # (INNER, DIM)   = to_out[0].weight.T
    g_norm = np.asarray(params["g_norm"], np.float32).reshape(DIM, 1)
    g_out = np.asarray(params["g_out"], np.float32).reshape(1, DIM)
    null_kv = np.asarray(params["null_kv"], np.float32)        # (2, DIM_HEAD)

    # Fold the input-LayerNorm gain and the attention scale into the q projection.
    wq_eff = g_norm * wq * SCALE
    # Weight slab: sublane-stacked, every segment start is a multiple of 8 (free views).
    w_slab = np.concatenate(
        [wq_eff, wkv[:, :INNER], wkv[:, INNER:], wout, g_out], axis=0)   # (4*32+1, 32)

    # Constant slab, 256 dense lanes (kl), sublane-stacked segments.
    c_slab = np.zeros((lay["rows"], kl), np.float32)

    l = np.arange(kl)
    b_of_l = l // lay["lanes"]             # key-lane batch
    h_of_l = (l % lay["lanes"]) // pw      # key-lane head
    j_of_l = l % pw                        # key-lane slot: 0 = null kv, 1..M = keys, >M = pad

    # rep_t (B*M, KL): context row m feeds lane (batch(m), h, pos(m)+1) for every head h.
    m = np.arange(batch * n_ctx)
    rep_t = ((b_of_l[None, :] == (m[:, None] // n_ctx)) &
             (j_of_l[None, :] == (m[:, None] % n_ctx) + 1)).astype(np.float32)
    c_slab[lay["off_rep"]:lay["off_rep"] + batch * n_ctx, :] = rep_t

    # head_mask (INNER, KL): feature c belongs to head c // DIM_HEAD.
    c = np.arange(INNER)
    hmask = (h_of_l[None, :] == (c[:, None] // DIM_HEAD)).astype(np.float32)
    c_slab[lay["off_hm"]:lay["off_hm"] + INNER, :] = hmask

    # null kv constants (INNER, KL): placed at the j == 0 lane of every (batch, head) segment.
    null_slot = (j_of_l == 0).astype(np.float32)[None, :]
    nk_col = null_kv[0][c % DIM_HEAD][:, None]
    nv_col = null_kv[1][c % DIM_HEAD][:, None]
    c_slab[lay["off_nk"]:lay["off_nk"] + INNER, :] = hmask * null_slot * nk_col
    c_slab[lay["off_nv"]:lay["off_nv"] + INNER, :] = hmask * null_slot * nv_col

    # collapse_t (B*HEADS, KL): lane -> softmax segment (linear in context length).
    s = np.arange(batch * HEADS)
    col_t = ((l[None, :] // pw) == s[:, None]).astype(np.float32)
    c_slab[lay["off_col"]:lay["off_col"] + batch * HEADS, :] = col_t

    # bias (B*N, KL): 0 for the query's own-batch valid lanes (null + M keys), NEG_BIG otherwise.
    nrow = np.arange(batch * n_q)
    valid = (b_of_l[None, :] == (nrow[:, None] // n_q)) & (j_of_l[None, :] <= n_ctx)
    c_slab[lay["off_bias"]:lay["off_bias"] + batch * n_q, :] = np.where(valid, 0.0, NEG_BIG)

    return {"w_slab": jnp.asarray(w_slab), "c_slab": jnp.asarray(c_slab)}


# ----------------------------------------------------------------------------
# Kernel
# ----------------------------------------------------------------------------
def _cross_attention_kernel(x_ref, ctx_ref, w_ref, c_ref, o_ref, *,
                            batch, n_q, n_ctx, lay):
    f32 = jnp.float32
    dn_t0 = (((0,), (0,)), ((), ()))     # contract dim0 with dim0
    dn_t1 = (((1,), (1,)), ((), ()))     # contract dim1 with dim1

    # Weight slab slices (static, sublane-aligned -> free views).
    wq = w_ref[0:DIM, :]                                   # (DIM, INNER), g_norm & scale folded
    wk = w_ref[DIM:2 * DIM, :]                             # (DIM, INNER)
    wv = w_ref[2 * DIM:3 * DIM, :]                         # (DIM, INNER)
    wout = w_ref[3 * DIM:3 * DIM + INNER, :]               # (INNER, DIM)
    g_out = w_ref[3 * DIM + INNER:3 * DIM + INNER + 1, :]  # (1, DIM)

    # Constant slab slices.
    rep_t = c_ref[lay["off_rep"]:lay["off_rep"] + batch * n_ctx, :]   # (B*M, KL)
    hmask = c_ref[lay["off_hm"]:lay["off_hm"] + INNER, :]             # (INNER, KL)
    nullk = c_ref[lay["off_nk"]:lay["off_nk"] + INNER, :]             # (INNER, KL)
    nullv = c_ref[lay["off_nv"]:lay["off_nv"] + INNER, :]             # (INNER, KL)
    col_t = c_ref[lay["off_col"]:lay["off_col"] + batch * HEADS, :]   # (B*H, KL)
    bias = c_ref[lay["off_bias"]:lay["off_bias"] + batch * n_q, :]    # (B*N, KL)

    # --- x = self.norm(x); context = Identity(context).  Gain folded into wq. ---
    x = x_ref[...]
    x = x / jnp.max(x, axis=-1, keepdims=True)
    mu = jnp.mean(x, axis=-1, keepdims=True)
    var = jnp.mean((x - mu) * (x - mu), axis=-1, keepdims=True)
    xn = (x - mu) * jax.lax.rsqrt(var + EPS)

    q = jnp.dot(xn, wq, preferred_element_type=f32)                        # (B*N, INNER)

    # --- block-diagonal K/V slabs, all batches at once (MXU replicate + VPU mask) ---
    ctx_rep = jax.lax.dot_general(ctx_ref[...], rep_t, dn_t0,
                                  preferred_element_type=f32)              # (DIM, KL)
    k_bd = jax.lax.dot_general(wk, ctx_rep, dn_t0,
                               preferred_element_type=f32) * hmask + nullk  # (INNER, KL)
    v_bd = jax.lax.dot_general(wv, ctx_rep, dn_t0,
                               preferred_element_type=f32) * hmask + nullv  # (INNER, KL)

    # --- sim + segmented softmax over each head's PW-lane block (f32, as in reference) ---
    sim = jnp.dot(q, k_bd, preferred_element_type=f32) + bias              # (B*N, KL)
    p = jnp.exp(sim - jnp.max(sim, axis=-1, keepdims=True))                # masked lanes -> 0
    seg = jax.lax.dot_general(p, col_t, dn_t1, preferred_element_type=f32)  # (B*N, B*H)
    den = jnp.dot(seg, col_t, preferred_element_type=f32)                  # (B*N, KL)
    # Floor keeps masked (all-zero) segments at exactly 0 instead of 0 * inf = NaN.
    attn = p * pl.reciprocal(jnp.maximum(den, DEN_FLOOR), approx=True)

    # --- attn @ V, output projection, final LayerNorm ---
    out = jax.lax.dot_general(attn, v_bd, dn_t1, preferred_element_type=f32)  # (B*N, INNER)
    out = jnp.dot(out, wout, preferred_element_type=f32)                      # (B*N, DIM)

    out = out / jnp.max(out, axis=-1, keepdims=True)
    mu = jnp.mean(out, axis=-1, keepdims=True)
    var = jnp.mean((out - mu) * (out - mu), axis=-1, keepdims=True)
    out = (out - mu) * jax.lax.rsqrt(var + EPS) * g_out
    o_ref[...] = out.astype(o_ref.dtype)


# ----------------------------------------------------------------------------
# Wrapper
# ----------------------------------------------------------------------------
@jax.jit
def cross_attention(x, context, w_slab, c_slab):
    B, N, _ = x.shape
    M = context.shape[1]
    lay = _layout(B, N, M)

    x2 = x.reshape(B * N, DIM)                  # free reshape (merge leading dims)
    c2 = context.reshape(B * M, CONTEXT_DIM)

    kernel = functools.partial(_cross_attention_kernel,
                               batch=B, n_q=N, n_ctx=M, lay=lay)

    # grid=(1,): whole problem as one block; every operand is DMA'd exactly once.
    out2 = pl.pallas_call(
        kernel,
        out_shape=jax.ShapeDtypeStruct((B * N, DIM), jnp.float32),
        grid_spec=pltpu.PrefetchScalarGridSpec(
            num_scalar_prefetch=0,
            grid=(1,),
            in_specs=[
                pl.BlockSpec((B * N, DIM), lambda i: (0, 0)),
                pl.BlockSpec((B * M, CONTEXT_DIM), lambda i: (0, 0)),
                pl.BlockSpec(tuple(w_slab.shape), lambda i: (0, 0)),
                pl.BlockSpec(tuple(c_slab.shape), lambda i: (0, 0)),
            ],
            out_specs=pl.BlockSpec((B * N, DIM), lambda i: (0, 0)),
        ),
        compiler_params=pltpu.CompilerParams(dimension_semantics=("arbitrary",)),
    )(x2, c2, w_slab, c_slab)
    return out2.reshape(B, N, DIM)


# ----------------------------------------------------------------------------
# Pure-JAX reference mirroring the PyTorch forward (correctness check only).
# ----------------------------------------------------------------------------
def _stable_layernorm(x, g):
    x = x / jnp.max(x, axis=-1, keepdims=True)
    mean = jnp.mean(x, axis=-1, keepdims=True)
    var = jnp.mean((x - mean) ** 2, axis=-1, keepdims=True)   # unbiased=False
    return (x - mean) * jax.lax.rsqrt(var + EPS) * g


def cross_attention_ref(x, context, params):
    B, N, _ = x.shape
    xn = _stable_layernorm(x, params["g_norm"])
    q = xn @ params["wq"]
    kv = context @ params["wkv"]
    k, v = kv[..., :INNER], kv[..., INNER:]

    def split_heads(t):  # 'b n (h d) -> b h n d'
        return t.reshape(t.shape[0], t.shape[1], HEADS, DIM_HEAD).transpose(0, 2, 1, 3)

    q, k, v = split_heads(q), split_heads(k), split_heads(v)
    nk = jnp.broadcast_to(params["null_kv"][0], (B, HEADS, 1, DIM_HEAD))
    nv = jnp.broadcast_to(params["null_kv"][1], (B, HEADS, 1, DIM_HEAD))
    k = jnp.concatenate([nk, k], axis=2)
    v = jnp.concatenate([nv, v], axis=2)
    q = q * SCALE
    sim = jnp.einsum('bhid,bhjd->bhij', q, k)        # cosine_sim_scale == 1
    attn = jax.nn.softmax(sim.astype(jnp.float32), axis=-1)
    out = jnp.einsum('bhij,bhjd->bhid', attn, v)
    out = out.transpose(0, 2, 1, 3).reshape(B, N, INNER)       # 'b h n d -> b n (h d)'
    out = out @ params["wout"]
    return _stable_layernorm(out, params["g_out"])


if __name__ == "__main__":
    B, N, M = 2, 8, 6
    key = jax.random.PRNGKey(0)
    k1, k2, k3, k4, k5, k6 = jax.random.split(key, 6)

    x = jax.random.normal(k1, (B, N, DIM), jnp.float32)
    context = jax.random.normal(k2, (B, M, CONTEXT_DIM), jnp.float32)

    # Deterministic synthetic parameters (shapes from __init__).
    params = {
        "wq": jax.random.normal(k3, (DIM, INNER), jnp.float32) * 0.05,               # to_q.weight.T
        "wkv": jax.random.normal(k4, (CONTEXT_DIM, 2 * INNER), jnp.float32) * 0.05,  # to_kv.weight.T
        "wout": jax.random.normal(k5, (INNER, DIM), jnp.float32) * 0.05,             # to_out[0].weight.T
        "g_norm": jnp.ones((1, DIM), jnp.float32),                                   # norm.g
        "g_out": jnp.ones((1, DIM), jnp.float32),                                    # to_out[1].g
        "null_kv": jax.random.normal(k6, (2, DIM_HEAD), jnp.float32),                # null_kv
    }

    prepped = prepare(params, B, N, M)          # one-time, outside the hot path
    out = cross_attention(x, context, prepped["w_slab"], prepped["c_slab"])
    jax.block_until_ready(out)

    ref = cross_attention_ref(x, context, params)
    assert out.shape == (B, N, DIM)
    err = float(jnp.max(jnp.abs(out - ref)))
    # Tolerance covers the EUP approximate reciprocal in the softmax denominator
    # (<~1e-3 relative); genuine bugs (head/batch mixing, bad masks) show up at O(1).
    assert jnp.allclose(out, ref, atol=5e-3, rtol=5e-3), err

    print("KERNEL_OK")
</pallas_src>

<mosaic_0001>
module attributes {stable_mosaic.version = 11 : i64} {
  func.func @_cross_attention_kernel(%arg0: i32, %arg1: memref<16x32xf32, #tpu.memory_space<vmem>>, %arg2: memref<12x32xf32, #tpu.memory_space<vmem>>, %arg3: memref<129x32xf32, #tpu.memory_space<vmem>>, %arg4: memref<144x256xf32, #tpu.memory_space<vmem>>, %arg5: memref<16x32xf32, #tpu.memory_space<vmem>>) attributes {dimension_semantics = [#tpu.dimension_semantics<arbitrary>], iteration_bounds = array<i64: 1>, scalar_prefetch = 0 : i64, scratch_operands = 0 : i64, tpu.core_type = #tpu.core_type<tc>, window_params = [{pipeline_mode = #tpu.pipeline_mode<synchronous>, transform_indices = @transform_0, window_bounds = array<i64: 16, 32>}, {pipeline_mode = #tpu.pipeline_mode<synchronous>, transform_indices = @transform_1, window_bounds = array<i64: 12, 32>}, {pipeline_mode = #tpu.pipeline_mode<synchronous>, transform_indices = @transform_2, window_bounds = array<i64: 129, 32>}, {pipeline_mode = #tpu.pipeline_mode<synchronous>, transform_indices = @transform_3, window_bounds = array<i64: 144, 256>}, {pipeline_mode = #tpu.pipeline_mode<synchronous>, transform_indices = @transform_4, window_bounds = array<i64: 16, 32>}]} {
    %c0 = arith.constant 0 : index
    %c0_0 = arith.constant 0 : index
    %0 = vector.load %arg3[%c0, %c0_0] : memref<129x32xf32, #tpu.memory_space<vmem>>, vector<32x32xf32>
    %c32 = arith.constant 32 : index
    %c0_1 = arith.constant 0 : index
    %1 = vector.load %arg3[%c32, %c0_1] : memref<129x32xf32, #tpu.memory_space<vmem>>, vector<32x32xf32>
    %c64 = arith.constant 64 : index
    %c0_2 = arith.constant 0 : index
    %2 = vector.load %arg3[%c64, %c0_2] : memref<129x32xf32, #tpu.memory_space<vmem>>, vector<32x32xf32>
    %c96 = arith.constant 96 : index
    %c0_3 = arith.constant 0 : index
    %3 = vector.load %arg3[%c96, %c0_3] : memref<129x32xf32, #tpu.memory_space<vmem>>, vector<32x32xf32>
    %c128 = arith.constant 128 : index
    %c0_4 = arith.constant 0 : index
    %4 = vector.load %arg3[%c128, %c0_4] : memref<129x32xf32, #tpu.memory_space<vmem>>, vector<1x32xf32>
    %c0_5 = arith.constant 0 : index
    %c0_6 = arith.constant 0 : index
    %5 = vector.load %arg4[%c0_5, %c0_6] : memref<144x256xf32, #tpu.memory_space<vmem>>, vector<12x256xf32>
    %c16 = arith.constant 16 : index
    %c0_7 = arith.constant 0 : index
    %6 = vector.load %arg4[%c16, %c0_7] : memref<144x256xf32, #tpu.memory_space<vmem>>, vector<32x256xf32>
    %c48 = arith.constant 48 : index
    %c0_8 = arith.constant 0 : index
    %7 = vector.load %arg4[%c48, %c0_8] : memref<144x256xf32, #tpu.memory_space<vmem>>, vector<32x256xf32>
    %c80 = arith.constant 80 : index
    %c0_9 = arith.constant 0 : index
    %8 = vector.load %arg4[%c80, %c0_9] : memref<144x256xf32, #tpu.memory_space<vmem>>, vector<32x256xf32>
    %c112 = arith.constant 112 : index
    %c0_10 = arith.constant 0 : index
    %9 = vector.load %arg4[%c112, %c0_10] : memref<144x256xf32, #tpu.memory_space<vmem>>, vector<16x256xf32>
    %c128_11 = arith.constant 128 : index
    %c0_12 = arith.constant 0 : index
    %10 = vector.load %arg4[%c128_11, %c0_12] : memref<144x256xf32, #tpu.memory_space<vmem>>, vector<16x256xf32>
    %c0_13 = arith.constant 0 : index
    %c0_14 = arith.constant 0 : index
    %11 = vector.load %arg1[%c0_13, %c0_14] : memref<16x32xf32, #tpu.memory_space<vmem>>, vector<16x32xf32>
    %cst = arith.constant dense<0xFF800000> : vector<16xf32>
    %12 = vector.multi_reduction <maximumf>, %11, %cst [1] : vector<16x32xf32> to vector<16xf32>
    %13 = vector.shape_cast %12 : vector<16xf32> to vector<16x1xf32>
    %14 = vector.broadcast %13 : vector<16x1xf32> to vector<16x32xf32>
    %15 = arith.divf %11, %14 : vector<16x32xf32>
    %cst_15 = arith.constant dense<0.000000e+00> : vector<16xf32>
    %16 = vector.multi_reduction <add>, %15, %cst_15 [1] : vector<16x32xf32> to vector<16xf32>
    %17 = vector.shape_cast %16 : vector<16xf32> to vector<16x1xf32>
    %cst_16 = arith.constant 3.200000e+01 : f32
    %18 = vector.broadcast %cst_16 : f32 to vector<16x1xf32>
    %19 = arith.divf %17, %18 : vector<16x1xf32>
    %20 = vector.broadcast %19 : vector<16x1xf32> to vector<16x32xf32>
    %21 = arith.subf %15, %20 : vector<16x32xf32>
    %22 = vector.broadcast %19 : vector<16x1xf32> to vector<16x32xf32>
    %23 = arith.subf %15, %22 : vector<16x32xf32>
    %24 = arith.mulf %21, %23 : vector<16x32xf32>
    %cst_17 = arith.constant dense<0.000000e+00> : vector<16xf32>
    %25 = vector.multi_reduction <add>, %24, %cst_17 [1] : vector<16x32xf32> to vector<16xf32>
    %26 = vector.shape_cast %25 : vector<16xf32> to vector<16x1xf32>
    %cst_18 = arith.constant 3.200000e+01 : f32
    %27 = vector.broadcast %cst_18 : f32 to vector<16x1xf32>
    %28 = arith.divf %26, %27 : vector<16x1xf32>
    %29 = vector.broadcast %19 : vector<16x1xf32> to vector<16x32xf32>
    %30 = arith.subf %15, %29 : vector<16x32xf32>
    %cst_19 = arith.constant 9.99999974E-6 : f32
    %31 = vector.broadcast %cst_19 : f32 to vector<16x1xf32>
    %32 = arith.addf %28, %31 : vector<16x1xf32>
    %33 = math.rsqrt %32 : vector<16x1xf32>
    %34 = vector.broadcast %33 : vector<16x1xf32> to vector<16x32xf32>
    %35 = arith.mulf %30, %34 : vector<16x32xf32>
    %cst_20 = arith.constant dense<0.000000e+00> : vector<16x32xf32>
    %36 = tpu.matmul %35, %0, %cst_20 {dimension_numbers = #tpu.dot_dimension_numbers<[1], [0], [0], [1], [0, 0, 1, 1], [], []>} : vector<16x32xf32>, vector<32x32xf32>, vector<16x32xf32> -> vector<16x32xf32>
    %c0_21 = arith.constant 0 : index
    %c0_22 = arith.constant 0 : index
    %37 = vector.load %arg2[%c0_21, %c0_22] : memref<12x32xf32, #tpu.memory_space<vmem>>, vector<12x32xf32>
    %cst_23 = arith.constant dense<0.000000e+00> : vector<32x256xf32>
    %38 = tpu.matmul %37, %5, %cst_23 {dimension_numbers = #tpu.dot_dimension_numbers<[0], [0], [1], [1], [0, 1, 1, 1], [], []>} : vector<12x32xf32>, vector<12x256xf32>, vector<32x256xf32> -> vector<32x256xf32>
    %cst_24 = arith.constant dense<0.000000e+00> : vector<32x256xf32>
    %39 = tpu.matmul %1, %38, %cst_24 {dimension_numbers = #tpu.dot_dimension_numbers<[0], [0], [1], [1], [0, 1, 1, 1], [], []>} : vector<32x32xf32>, vector<32x256xf32>, vector<32x256xf32> -> vector<32x256xf32>
    %40 = arith.mulf %39, %6 : vector<32x256xf32>
    %41 = arith.addf %40, %7 : vector<32x256xf32>
    %cst_25 = arith.constant dense<0.000000e+00> : vector<32x256xf32>
    %42 = tpu.matmul %2, %38, %cst_25 {dimension_numbers = #tpu.dot_dimension_numbers<[0], [0], [1], [1], [0, 1, 1, 1], [], []>} : vector<32x32xf32>, vector<32x256xf32>, vector<32x256xf32> -> vector<32x256xf32>
    %43 = arith.mulf %42, %6 : vector<32x256xf32>
    %44 = arith.addf %43, %8 : vector<32x256xf32>
    %cst_26 = arith.constant dense<0.000000e+00> : vector<16x256xf32>
    %45 = tpu.matmul %36, %41, %cst_26 {dimension_numbers = #tpu.dot_dimension_numbers<[1], [0], [0], [1], [0, 0, 1, 1], [], []>} : vector<16x32xf32>, vector<32x256xf32>, vector<16x256xf32> -> vector<16x256xf32>
    %46 = arith.addf %45, %10 : vector<16x256xf32>
    %cst_27 = arith.constant dense<0xFF800000> : vector<16xf32>
    %47 = vector.multi_reduction <maximumf>, %46, %cst_27 [1] : vector<16x256xf32> to vector<16xf32>
    %48 = vector.shape_cast %47 : vector<16xf32> to vector<16x1xf32>
    %49 = vector.broadcast %48 : vector<16x1xf32> to vector<16x256xf32>
    %50 = arith.subf %46, %49 : vector<16x256xf32>
    %51 = math.exp %50 : vector<16x256xf32>
    %cst_28 = arith.constant dense<0.000000e+00> : vector<16x16xf32>
    %52 = tpu.matmul %51, %9, %cst_28 {dimension_numbers = #tpu.dot_dimension_numbers<[1], [1], [0], [0], [0, 0, 1, 0], [], []>} : vector<16x256xf32>, vector<16x256xf32>, vector<16x16xf32> -> vector<16x16xf32>
    %cst_29 = arith.constant dense<0.000000e+00> : vector<16x256xf32>
    %53 = tpu.matmul %52, %9, %cst_29 {dimension_numbers = #tpu.dot_dimension_numbers<[1], [0], [0], [1], [0, 0, 1, 1], [], []>} : vector<16x16xf32>, vector<16x256xf32>, vector<16x256xf32> -> vector<16x256xf32>
    %cst_30 = arith.constant 1.000000e-30 : f32
    %54 = vector.broadcast %cst_30 : f32 to vector<16x256xf32>
    %55 = arith.maximumf %53, %54 : vector<16x256xf32>
    %56 = tpu.reciprocal %55 {approx = true} : vector<16x256xf32> -> vector<16x256xf32>
    %57 = arith.mulf %51, %56 : vector<16x256xf32>
    %cst_31 = arith.constant dense<0.000000e+00> : vector<16x32xf32>
    %58 = tpu.matmul %57, %44, %cst_31 {dimension_numbers = #tpu.dot_dimension_numbers<[1], [1], [0], [0], [0, 0, 1, 0], [], []>} : vector<16x256xf32>, vector<32x256xf32>, vector<16x32xf32> -> vector<16x32xf32>
    %cst_32 = arith.constant dense<0.000000e+00> : vector<16x32xf32>
    %59 = tpu.matmul %58, %3, %cst_32 {dimension_numbers = #tpu.dot_dimension_numbers<[1], [0], [0], [1], [0, 0, 1, 1], [], []>} : vector<16x32xf32>, vector<32x32xf32>, vector<16x32xf32> -> vector<16x32xf32>
    %cst_33 = arith.constant dense<0xFF800000> : vector<16xf32>
    %60 = vector.multi_reduction <maximumf>, %59, %cst_33 [1] : vector<16x32xf32> to vector<16xf32>
    %61 = vector.shape_cast %60 : vector<16xf32> to vector<16x1xf32>
    %62 = vector.broadcast %61 : vector<16x1xf32> to vector<16x32xf32>
    %63 = arith.divf %59, %62 : vector<16x32xf32>
    %cst_34 = arith.constant dense<0.000000e+00> : vector<16xf32>
    %64 = vector.multi_reduction <add>, %63, %cst_34 [1] : vector<16x32xf32> to vector<16xf32>
    %65 = vector.shape_cast %64 : vector<16xf32> to vector<16x1xf32>
    %cst_35 = arith.constant 3.200000e+01 : f32
    %66 = vector.broadcast %cst_35 : f32 to vector<16x1xf32>
    %67 = arith.divf %65, %66 : vector<16x1xf32>
    %68 = vector.broadcast %67 : vector<16x1xf32> to vector<16x32xf32>
    %69 = arith.subf %63, %68 : vector<16x32xf32>
    %70 = vector.broadcast %67 : vector<16x1xf32> to vector<16x32xf32>
    %71 = arith.subf %63, %70 : vector<16x32xf32>
    %72 = arith.mulf %69, %71 : vector<16x32xf32>
    %cst_36 = arith.constant dense<0.000000e+00> : vector<16xf32>
    %73 = vector.multi_reduction <add>, %72, %cst_36 [1] : vector<16x32xf32> to vector<16xf32>
    %74 = vector.shape_cast %73 : vector<16xf32> to vector<16x1xf32>
    %cst_37 = arith.constant 3.200000e+01 : f32
    %75 = vector.broadcast %cst_37 : f32 to vector<16x1xf32>
    %76 = arith.divf %74, %75 : vector<16x1xf32>
    %77 = vector.broadcast %67 : vector<16x1xf32> to vector<16x32xf32>
    %78 = arith.subf %63, %77 : vector<16x32xf32>
    %cst_38 = arith.constant 9.99999974E-6 : f32
    %79 = vector.broadcast %cst_38 : f32 to vector<16x1xf32>
    %80 = arith.addf %76, %79 : vector<16x1xf32>
    %81 = math.rsqrt %80 : vector<16x1xf32>
    %82 = vector.broadcast %81 : vector<16x1xf32> to vector<16x32xf32>
    %83 = arith.mulf %78, %82 : vector<16x32xf32>
    %84 = vector.broadcast %4 : vector<1x32xf32> to vector<16x32xf32>
    %85 = arith.mulf %83, %84 : vector<16x32xf32>
    %c0_39 = arith.constant 0 : index
    %c0_40 = arith.constant 0 : index
    %86 = vector.load %arg5[%c0_39, %c0_40] : memref<16x32xf32, #tpu.memory_space<vmem>>, vector<16x32xf32>
    tpu.vector_store %arg5[%c0_39, %c0_40], %85 {strides = array<i32>} : memref<16x32xf32, #tpu.memory_space<vmem>>, vector<16x32xf32>,
    return
  }
  func.func @transform_0(%arg0: i32) -> (i32, i32) {
    %c0_i32 = arith.constant 0 : i32
    %c0_i32_0 = arith.constant 0 : i32
    %c0_i32_1 = arith.constant 0 : i32
    return %c0_i32, %c0_i32_0 : i32, i32
  }
  func.func @transform_1(%arg0: i32) -> (i32, i32) {
    %c0_i32 = arith.constant 0 : i32
    %c0_i32_0 = arith.constant 0 : i32
    %c0_i32_1 = arith.constant 0 : i32
    return %c0_i32, %c0_i32_0 : i32, i32
  }
  func.func @transform_2(%arg0: i32) -> (i32, i32) {
    %c0_i32 = arith.constant 0 : i32
    %c0_i32_0 = arith.constant 0 : i32
    %c0_i32_1 = arith.constant 0 : i32
    return %c0_i32, %c0_i32_0 : i32, i32
  }
  func.func @transform_3(%arg0: i32) -> (i32, i32) {
    %c0_i32 = arith.constant 0 : i32
    %c0_i32_0 = arith.constant 0 : i32
    %c0_i32_1 = arith.constant 0 : i32
    return %c0_i32, %c0_i32_0 : i32, i32
  }
  func.func @transform_4(%arg0: i32) -> (i32, i32) {
    %c0_i32 = arith.constant 0 : i32
    %c0_i32_0 = arith.constant 0 : i32
    %c0_i32_1 = arith.constant 0 : i32
    return %c0_i32, %c0_i32_0 : i32, i32
  }
}

</mosaic_0001>

<bundles_post_ra>
// kernel: cross_attention.1
= control target key start
LH: loop header
LB: loop body
LE: loop exit
PB: predicated region body
PF: predicated region fallthrough
CT: control target
= control target key end

     0   :  { %9 = vsyncpa [#allocation3], 0  ;;  %s1485_s0 = inlined_call_operand.vmem [shape: f32[16,32], index: 0, kind: input, shape index: {}]   ;;  %s1486_s1 = inlined_call_operand.vmem [shape: f32[12,32], index: 1, kind: input, shape index: {}]   ;;  %s1487_s2 = inlined_call_operand.vmem [shape: f32[129,32], index: 2, kind: input, shape index: {}]   ;;  %s1488_s3 = inlined_call_operand.hbm [shape: f32[144,256], index: 3, kind: input, shape index: {}]   ;;  %s1489_s4 = inlined_call_operand.hbm [shape: f32[16,32], index: 4, kind: output, shape index: {}]  }
   0x1   :  { %10 = vsyncpa [#allocation4], 0  ;;  %s1280_s15 = smov [#allocation2]  }
   0x2   :  { %s22_s16 = sshll.u32 %s1280_s15, 4  ;;  %s23_s16 = int_to_ptr.vmem [resolvable:$true] %s22_s16 }
   0x3   :  { %s1244_s17 = scalar_lea.vmem %s23_s16, 4608  ;;  %p1249_p1 = scmp.lt.s32.totalorder %s23_s16, %s23_s16 }
   0x4   :  { %p1245_p0 = scmp.ne.s32.totalorder %s23_s16, %s1244_s17  ;;  %p1250_p2 = scmp.lt.s32.totalorder %s1244_s17, %s1244_s17 }
   0x6   :  { %p1251_p3 = por %p1250_p2, %p1249_p1 }
   0x8   :  { %p1252_p4 = pnand %p1251_p3, %p1245_p0 }
   0xa   :  { %1255 = shalt.err (!%p1252_p4)
}
   0xb   :  { %s1281_s18 = smov 256   ;;  %s1282_s19 = smov 16  }
   0xc   :  { %28 = dma.hbm_to_vmem [thread:$0]  %s1488_s3, 4608, %s23_s16, [#allocation3], %s1281_s18, %s1281_s18, %s1282_s19  }
   0xd   :  { %1276 = dma.done.wait [#allocation3], 4608  }
   0xe   :  { %1277 = vsyncadd [#allocation3], 4294962688  ;;  %vm87_vm0 = vcmask 261120   ;;  %v85_v0 = vld [vmem:[%s1485_s0] sm:$0xff]  ;;  %v86_v1 = vld [vmem:[%s1485_s0 + $0x8] sm:$0xff]  ;;  %vm253_vm1 = vcmask 1043456  }
   0xf   :  { %v88_v2 = vsel %vm87_vm0, %v85_v0, -inf  ;;  %v91_v3 = vsel %vm87_vm0, %v86_v1, -inf  ;;  %v35_v22 = vld [vmem:[%s1487_s2 + $0x18] sm:$0xff]  ;;  %v34_v23 = vld [vmem:[%s1487_s2 + $0x10] sm:$0xff]  ;;  %v33_v24 = vld [vmem:[%s1487_s2 + $0x8] sm:$0xff]  ;;  %v1283_v30 = vmov 0.0  }
  0x10   :  { %89 = vmax.xlane.f32.xlu0 %v88_v2  ;;  %1171 = vmatprep.subr.mxu0 %v35_v22  ;;  %v32_v25 = vld [vmem:[%s1487_s2] sm:$0xff]  ;;  %v52_v26 = vld [vmem:[#allocation2 + $0x18] sm:$0xf]  ;;  %v51_v27 = vld [vmem:[#allocation2 + $0x10] sm:$0xf]  ;;  %vm240_vm2 = vcmask 97280  }
  0x11   :  { %1172 = vmatpush3.msra.mxu0 %v35_v22  ;;  %1193 = vmatprep.subr.msk.mxu1 %vm253_vm1, %v52_v26  ;;  %v50_v28 = vld [vmem:[#allocation2 + $0x8] sm:$0xff]  ;;  %v49_v29 = vld [vmem:[#allocation2] sm:$0xff]  ;;  %v38_v35 = vld [vmem:[%s1487_s2 + $0x30] sm:$0xff]  ;;  %vm823_vm3 = vcmask 130048   ;;  %s1284_s7 = smov [#allocation5]  }
  0x12   :  { %1173 = vmatprep.subr.mxu0 %v34_v23  ;;  %1195 = vmatpush1.msk.msra.mxu1 %vm253_vm1, %v51_v27  ;;  %v206_v31 = vld [vmem:[%s1486_s1] sm:$0xff]  ;;  %v207_v32 = vld [vmem:[%s1486_s1 + $0x8] sm:$0xf]  ;;  %v39_v36 = vld [vmem:[%s1487_s2 + $0x38] sm:$0xff]  ;;  %s1124_s8 = sshll.u32 %s1284_s7, 4  ;;  %s1125_s8 = int_to_ptr.vmem [resolvable:$true] %s1124_s8 }
  0x13   :  { %1174 = vmatpush3.msra.mxu0 %v34_v23  ;;  %1194 = vmatprep.subr.mxu1 %v50_v28  ;;  %v36_v33 = vld [vmem:[%s1487_s2 + $0x20] sm:$0xff]  ;;  %v37_v34 = vld [vmem:[%s1487_s2 + $0x28] sm:$0xff]  ;;  %s1256_s9 = scalar_lea.vmem %s1125_s8, 256  ;;  %p1261_p6 = scmp.lt.s32.totalorder %s1125_s8, %s1125_s8 }
  0x14   :  { %92 = vmax.xlane.f32.xlu0 %v91_v3  ;;  %1175 = vmatprep.subr.mxu0 %v33_v24  ;;  %v66_v22 = vld [vmem:[#allocation2 + $0x88] sm:$0xff]  ;;  %v1399_v23 = vld [vmem:[#allocation2 + $0x20] sm:$0xff]  ;;  %p1257_p5 = scmp.ne.s32.totalorder %s1125_s8, %s1256_s9  ;;  %p1262_p7 = scmp.lt.s32.totalorder %s1256_s9, %s1256_s9 }
  0x15   :  { %1176 = vmatpush3.msra.mxu0 %v33_v24  ;;  %336 = vmatprep.mubr.f32.mxu1 %v1283_v30 }
  0x16   :  { %1177 = vmatprep.subr.mxu0 %v32_v25  ;;  %1196 = vmatpush1.msra.mxu1 %v49_v29  ;;  %p1263_p8 = por %p1262_p7, %p1261_p6 }
  0x17   :  { %1178 = vmatpush3.msra.mxu0 %v32_v25  ;;  %v65_v25 = vld [vmem:[#allocation2 + $0x80] sm:$0xff] }
  0x18   :  { %1138 = vmatprep.subr.msk.mxu0 %vm253_vm1, %v52_v26  ;;  %p1264_p9 = pnand %p1263_p8, %p1257_p5 }
  0x99   :  { %v90_v4 = vpop.xlane.xlu0 %89 }
  0x9a   :  { %1204 = vrcp.f32 %v90_v4 }
  0x9d   :  { %v93_v5 = vpop.xlane.xlu0 %92 }
  0x9e   :  { %1206 = vrcp.f32 %v93_v5 }
  0xa7   :  { %v1205_v6 = vpop.eup %1204 }
  0xa8   :  { %v95_v7 = vmul.f32 %v1205_v6, %v85_v0 }
  0xaa   :  { %v98_v8 = vsel %vm87_vm0, %v95_v7, 0.0 }
  0xab   :  { %v1207_v9 = vpop.eup %1206  ;;  %99 = vadd.xlane.f32.xlu1 %v98_v8  ;;  %v1383_v8 = vld [vmem:[#allocation2 + $0x48] sm:$0xff] }
  0xac   :  { %v97_v10 = vmul.f32 %v1207_v9, %v86_v1 }
  0xae   :  { %v101_v11 = vsel %vm87_vm0, %v97_v10, 0.0 }
  0xaf   :  { %102 = vadd.xlane.f32.xlu1 %v101_v11  ;;  %v1387_v11 = vld [vmem:[#allocation2 + $0x40] sm:$0xff] }
 0x134   :  { %v100_v12 = vpop.xlane.xlu1 %99 }
 0x135   :  { %v105_v13 = vmul.f32 0.03125, %v100_v12  ;;  %v1389_v12 = vld [vmem:[#allocation2 + $0x38] sm:$0xff] }
 0x137   :  { %v107_v14 = vsub.f32 %v95_v7, %v105_v13  ;;  %v1381_v7 = vld [vmem:[#allocation2 + $0x50] sm:$0xff] }
 0x138   :  { %v103_v15 = vpop.xlane.xlu1 %102 }
 0x139   :  { %v106_v16 = vmul.f32 0.03125, %v103_v15  ;;  %v109_v17 = vmul.f32 %v107_v14, %v107_v14 }
 0x13b   :  { %v108_v18 = vsub.f32 %v97_v10, %v106_v16  ;;  %v111_v19 = vsel %vm87_vm0, %v109_v17, 0.0  ;;  %v1385_v10 = vld [vmem:[#allocation2 + $0x58] sm:$0xff]  ;;  %v1392_v16 = vld [vmem:[#allocation2 + $0x30] sm:$0xff] }
 0x13c   :  { %112 = vadd.xlane.f32.xlu0 %v111_v19 }
 0x13d   :  { %v110_v20 = vmul.f32 %v108_v18, %v108_v18 }
 0x13f   :  { %v114_v21 = vsel %vm87_vm0, %v110_v20, 0.0  ;;  %v1396_v20 = vld [vmem:[#allocation2 + $0x28] sm:$0xff] }
 0x140   :  { %115 = vadd.xlane.f32.xlu1 %v114_v21 }
 0x169   :  { %208 = vxpose.xlu0.b32.start [1/2] (short) (narrow) %v206_v31, 32 }
 0x16d   :  { %209 = vxpose.xlu0.b32.end [2/2] (short) (narrow) %v207_v32, 32  ;;  %v63_v32 = vld [vmem:[#allocation2 + $0x70] sm:$0xff] }
 0x173   :  { %349 = vxpose.xlu1.b32.start [1/4] (short) (narrow) %v36_v33, 32 }
 0x177   :  { %350 = vxpose.xlu1.b32.cont [2/4] (short) (narrow) %v37_v34, 32 }
 0x17b   :  { %351 = vxpose.xlu1.b32.cont [3/4] (short) (narrow) %v38_v35, 32  ;;  %v62_v35 = vld [vmem:[#allocation2 + $0x68] sm:$0xff] }
 0x17f   :  { %352 = vxpose.xlu1.b32.end [4/4] (short) (narrow) %v39_v36, 32 }
 0x1c5   :  { %v113_v37 = vpop.xlane.xlu0 %112 }
 0x1c6   :  { %v117_v38 = vmul.f32 0.03125, %v113_v37  ;;  %v61_v37 = vld [vmem:[#allocation2 + $0x60] sm:$0xff] }
 0x1c8   :  { %v119_v39 = vadd.f32 1e-05, %v117_v38 }
 0x1c9   :  { %v116_v40 = vpop.xlane.xlu1 %115 }
 0x1ca   :  { %1208 = vrsqrt.f32 %v119_v39  ;;  %v118_v41 = vmul.f32 0.03125, %v116_v40 }
 0x1cc   :  { %v120_v42 = vadd.f32 1e-05, %v118_v41 }
 0x1ce   :  { %1210 = vrsqrt.f32 %v120_v42  ;;  %v81_v42 = vld [vmem:[#allocation2 + $0x100] sm:$0xff] }
 0x1d7   :  { %v1209_v43 = vpop.eup %1208 }
 0x1d8   :  { %v123_v44 = vmul.f32 %v1209_v43, %v107_v14  ;;  %v68_v14 = vld [vmem:[#allocation2 + $0x98] sm:$0xff] }
 0x1da   :  { %1179 = vmatprep.mubr.msk.f32.mxu0 %vm87_vm0, %v123_v44  ;;  %v82_v44 = vld [vmem:[#allocation2 + $0x108] sm:$0xff] }
 0x1db   :  { %v1211_v45 = vpop.eup %1210 }
 0x1dc   :  { %v124_v46 = vmul.f32 %v1211_v45, %v108_v18  ;;  %v67_v18 = vld [vmem:[#allocation2 + $0x90] sm:$0xff] }
 0x1de   :  { %1180 = vmatmul.mubr.msk.f32.vlgmr.msra.gmra.mxu0 %vm87_vm0, %v124_v46 }
 0x1df   :  { %1139 = vmatpush1.msk.msra.mxu0 %vm253_vm1, %v51_v27  ;;  %324 = vmatprep.mubr.f32.mxu0 %v1283_v30 }
 0x1e0   :  { %290 = vmatprep.subr.mxu0 %v50_v28  ;;  %v64_v28 = vld [vmem:[#allocation2 + $0x78] sm:$0xff] }
 0x1e1   :  { %291 = vmatpush1.msra.mxu0 %v49_v29 }
 0x1e5   :  { %v224_v47 = vpop.trf.xlu0 }
 0x1e6   :  { %1140 = vmatmul.mubr.msk.f32.vlgmr.msra.gmra.mxu0 %vm240_vm2, %v224_v47 }
 0x1e7   :  { %330 = vmatprep.mubr.f32.mxu0 %v1283_v30 }
 0x1e9   :  { %v225_v48 = vpop.trf.xlu0 }
 0x1ea   :  { %1141 = vmatmul.mubr.msk.f32.gmra.mxu0 %vm240_vm2, %v225_v48  ;;  %v83_v48 = vld [vmem:[#allocation2 + $0x110] sm:$0xff] }
 0x1eb   :  { %457 = vmatprep.mubr.f32.mxu0 %v1283_v30 }
 0x1ed   :  { %v226_v49 = vpop.trf.xlu0 }
 0x1ee   :  { %1142 = vmatmul.mubr.msk.f32.vlgmr.msra.gmra.mxu1 %vm240_vm2, %v226_v49 }
 0x1ef   :  { %342 = vmatprep.mubr.f32.mxu1 %v1283_v30  ;;  %v365_v58 = vpop.trf.xlu1 }
 0x1f1   :  { %v227_v50 = vpop.trf.xlu0 }
 0x1f2   :  { %1143 = vmatmul.mubr.msk.f32.gmra.mxu1 %vm240_vm2, %v227_v50  ;;  %v84_v50 = vld [vmem:[#allocation2 + $0x118] sm:$0xff] }
 0x1f3   :  { %606 = vmatprep.mubr.f32.mxu1 %v1283_v30  ;;  %v366_v62 = vpop.trf.xlu1 }
 0x1f7   :  { %v367_v63 = vpop.trf.xlu1 }
 0x1fb   :  { %v368_v0 = vpop.trf.xlu1 }
 0x29e   :  { %v1369_v51 = vpop.f32.mrf.mxu0 }
 0x2a0   :  { %v1371_v52 = vpop.f32.mrf.mxu0 }
 0x2a6   :  { %v326_v53 = vpop.f32.mrf.mxu0 }
 0x2a8   :  { %v328_v55 = vpop.f32.mrf.mxu0 }
 0x2aa   :  { %v332_v59 = vpop.f32.mrf.mxu0 }
 0x2ac   :  { %v334_v61 = vpop.f32.mrf.mxu0 }
 0x2ae   :  { %v338_v54 = vpop.f32.mrf.mxu1 }
 0x2b0   :  { %v340_v56 = vpop.f32.mrf.mxu1 }
 0x2b2   :  { %v344_v57 = vpop.f32.mrf.mxu1 }
 0x2b4   :  { %v346_v60 = vpop.f32.mrf.mxu1 }
 0x2b5   :  { %417 = vmatprep.subr.mxu0 %v346_v60  ;;  %566 = vmatprep.subr.mxu1 %v346_v60  ;;  %v79_v60 = vld [vmem:[#allocation2 + $0xf0] sm:$0xff] }
 0x2b6   :  { %418 = vmatpush1.msra.mxu0 %v344_v57  ;;  %567 = vmatpush1.msra.mxu1 %v344_v57  ;;  %v41_v57 = vld [vmem:[%s1487_s2 + $0x48] sm:$0xff] }
 0x2b7   :  { %419 = vmatprep.subr.mxu0 %v340_v56  ;;  %568 = vmatprep.subr.mxu1 %v340_v56 }
 0x2b8   :  { %420 = vmatpush1.msra.mxu0 %v338_v54  ;;  %569 = vmatpush1.msra.mxu1 %v338_v54 }
 0x2b9   :  { %421 = vmatprep.subr.mxu0 %v334_v61  ;;  %570 = vmatprep.subr.mxu1 %v334_v61  ;;  %v43_v61 = vld [vmem:[%s1487_s2 + $0x58] sm:$0xff] }
 0x2ba   :  { %422 = vmatpush1.msra.mxu0 %v332_v59  ;;  %571 = vmatpush1.msra.mxu1 %v332_v59  ;;  %v80_v59 = vld [vmem:[#allocation2 + $0xf8] sm:$0xff] }
 0x2bb   :  { %423 = vmatprep.subr.mxu0 %v328_v55  ;;  %572 = vmatprep.subr.mxu1 %v328_v55 }
 0x2bc   :  { %424 = vmatpush1.msra.mxu0 %v326_v53  ;;  %573 = vmatpush1.msra.mxu1 %v326_v53 }
 0x2bd   :  { %1144 = vmatmul.mubr.msk.f32.vlgmr.msra.gmra.mxu0 %vm87_vm0, %v365_v58  ;;  %v42_v58 = vld [vmem:[%s1487_s2 + $0x50] sm:$0xff]  ;;  %776 = vmatprep.subr.mxu1 %v80_v59 }
 0x2be   :  { %463 = vmatprep.mubr.f32.mxu0 %v1283_v30 }
 0x2c1   :  { %1145 = vmatmul.mubr.msk.f32.gmra.mxu0 %vm87_vm0, %v366_v62  ;;  %v78_v62 = vld [vmem:[#allocation2 + $0xe8] sm:$0xff] }
 0x2c2   :  { %469 = vmatprep.mubr.f32.mxu0 %v1283_v30 }
 0x2c5   :  { %1146 = vmatmul.mubr.msk.f32.gmra.mxu0 %vm87_vm0, %v367_v63  ;;  %v77_v63 = vld [vmem:[#allocation2 + $0xe0] sm:$0xff] }
 0x2c6   :  { %475 = vmatprep.mubr.f32.mxu0 %v1283_v30 }
 0x2c9   :  { %1147 = vmatmul.mubr.msk.f32.gmra.mxu0 %vm87_vm0, %v368_v0 }
 0x2ca   :  { %717 = vmatprep.mubr.f32.mxu0 %v1283_v30 }
 0x37d   :  { %v459_v1 = vpop.f32.mrf.mxu0 }
 0x37e   :  { %v482_v34 = vmul.f32 %v459_v1, %v1399_v23 }
 0x37f   :  { %v461_v2 = vpop.f32.mrf.mxu0 }
 0x380   :  { %v483_v31 = vmul.f32 %v461_v2, %v1396_v20  ;;  %v490_v41 = vadd.f32 %v482_v34, %v61_v37 }
 0x381   :  { %v465_v3 = vpop.f32.mrf.mxu0 }
 0x382   :  { %v484_v27 = vmul.f32 %v465_v3, %v1392_v16  ;;  %v491_v40 = vadd.f32 %v483_v31, %v62_v35  ;;  %v76_v35 = vld [vmem:[#allocation2 + $0xd8] sm:$0xff] }
 0x383   :  { %v467_v4 = vpop.f32.mrf.mxu0 }
 0x384   :  { %v485_v24 = vmul.f32 %v467_v4, %v1389_v12  ;;  %v492_v39 = vadd.f32 %v484_v27, %v63_v32 }
 0x385   :  { %v471_v5 = vpop.f32.mrf.mxu0 }
 0x386   :  { %v486_v21 = vmul.f32 %v471_v5, %v1387_v11  ;;  %v493_v38 = vadd.f32 %v485_v24, %v64_v28 }
 0x387   :  { %v473_v6 = vpop.f32.mrf.mxu0 }
 0x388   :  { %v487_v17 = vmul.f32 %v473_v6, %v1383_v8  ;;  %v494_v36 = vadd.f32 %v486_v21, %v65_v25 }
 0x389   :  { %v477_v9 = vpop.f32.mrf.mxu0 }
 0x38a   :  { %v488_v13 = vmul.f32 %v477_v9, %v1381_v7  ;;  %v495_v33 = vadd.f32 %v487_v17, %v66_v22 }
 0x38b   :  { %v479_v15 = vpop.f32.mrf.mxu0 }
 0x38c   :  { %v489_v19 = vmul.f32 %v479_v15, %v1385_v10  ;;  %v496_v29 = vadd.f32 %v488_v13, %v67_v18 }
 0x38e   :  { %v497_v26 = vadd.f32 %v489_v19, %v68_v14 }
 0x390   :  { %677 = vmatprep.subr.mxu0 %v497_v26 }
 0x391   :  { %678 = vmatpush1.msra.mxu0 %v496_v29 }
 0x392   :  { %679 = vmatprep.subr.mxu0 %v495_v33 }
 0x393   :  { %680 = vmatpush1.msra.mxu0 %v494_v36 }
 0x394   :  { %681 = vmatprep.subr.mxu0 %v493_v38  ;;  %v75_v38 = vld [vmem:[#allocation2 + $0xd0] sm:$0xff] }
 0x395   :  { %682 = vmatpush1.msra.mxu0 %v492_v39 }
 0x396   :  { %683 = vmatprep.subr.mxu0 %v491_v40  ;;  %v74_v40 = vld [vmem:[#allocation2 + $0xc8] sm:$0xff] }
 0x397   :  { %684 = vmatpush1.msra.mxu0 %v490_v41 }
 0x398   :  { %1152 = vmatmul.mubr.msk.f32.vlgmr.msra.gmra.mxu0 %vm87_vm0, %v1371_v52  ;;  %858 = vmatprep.subr.mxu0 %v80_v59 }
 0x399   :  { %723 = vmatprep.mubr.f32.mxu0 %v1283_v30  ;;  %859 = vmatpush1.msra.mxu0 %v79_v60 }
 0x39a   :  { %860 = vmatprep.subr.mxu0 %v78_v62 }
 0x39b   :  { %861 = vmatpush1.msra.mxu0 %v77_v63 }
 0x39c   :  { %1153 = vmatmul.mubr.msk.f32.gmra.mxu0 %vm87_vm0, %v1369_v51  ;;  %v40_v51 = vld [vmem:[%s1487_s2 + $0x40] sm:$0xff] }
 0x39d   :  { %894 = vmatprep.mubr.f32.mxu0 %v1283_v30 }
 0x458   :  { %v719_v43 = vpop.f32.mrf.mxu0 }
 0x459   :  { %v720_v46 = vadd.f32 %v719_v43, %v81_v42 }
 0x45a   :  { %v721_v45 = vpop.f32.mrf.mxu0 }
 0x45b   :  { %v722_v47 = vadd.f32 %v721_v45, %v82_v44 }
 0x45c   :  { %v725_v49 = vpop.f32.mrf.mxu0 }
 0x45d   :  { %v730_v53 = vmax.f32 %v720_v46, %v722_v47  ;;  %v726_v55 = vadd.f32 %v725_v49, %v83_v48 }
 0x45e   :  { %v727_v54 = vpop.f32.mrf.mxu0 }
 0x45f   :  { %v728_v52 = vadd.f32 %v727_v54, %v84_v50  ;;  %731 = vmax.xlane.f32.xlu0 %v730_v53  ;;  %v71_v53 = vld [vmem:[#allocation2 + $0xb0] sm:$0xff] }
 0x461   :  { %v733_v56 = vmax.f32 %v726_v55, %v728_v52 }
 0x463   :  { %734 = vmax.xlane.f32.xlu1 %v733_v56 }
 0x48c   :  { %498 = vxpose.xlu0.b32.start [1/4] (short) (narrow) %v40_v51, 32 }
 0x490   :  { %499 = vxpose.xlu0.b32.cont [2/4] (short) (narrow) %v41_v57, 32 }
 0x494   :  { %500 = vxpose.xlu0.b32.cont [3/4] (short) (narrow) %v42_v58, 32 }
 0x498   :  { %501 = vxpose.xlu0.b32.end [4/4] (short) (narrow) %v43_v61, 32 }
 0x4e8   :  { %v732_v0 = vpop.xlane.xlu0 %731 }
 0x4e9   :  { %v737_v1 = vsub.f32 %v722_v47, %v732_v0  ;;  %v736_v3 = vsub.f32 %v720_v46, %v732_v0  ;;  %v73_v46 = vld [vmem:[#allocation2 + $0xc0] sm:$0xff] }
 0x4eb   :  { %v742_v4 = vmul.f32 1.442695, %v737_v1  ;;  %v740_v6 = vmul.f32 1.442695, %v736_v3 }
 0x4ec   :  { %v735_v2 = vpop.xlane.xlu1 %734 }
 0x4ed   :  { %v739_v5 = vsub.f32 %v728_v52, %v735_v2  ;;  %v738_v9 = vsub.f32 %v726_v55, %v735_v2  ;;  %1212 = vpow2.f32 %v742_v4  ;;  %v69_v52 = vld [vmem:[#allocation2 + $0xa0] sm:$0xff] }
 0x4ee   :  { %1214 = vpow2.f32 %v740_v6 }
 0x4ef   :  { %v746_v13 = vmul.f32 1.442695, %v739_v5  ;;  %v744_v15 = vmul.f32 1.442695, %v738_v9 }
 0x4f1   :  { %1216 = vpow2.f32 %v746_v13  ;;  %v45_v13 = vld [vmem:[%s1487_s2 + $0x68] sm:$0xff] }
 0x4f2   :  { %1218 = vpow2.f32 %v744_v15 }
 0x4fa   :  { %v1429_v21 = vpop.eup %1212 }
 0x4fb   :  { %v1433_v22 = vpop.eup %1214 }
 0x4fe   :  { %v1435_v24 = vpop.eup %1216 }
 0x4ff   :  { %v1439_v25 = vpop.eup %1218 }
 0x508   :  { %v514_v14 = vpop.trf.xlu0 }
 0x509   :  { %1148 = vmatmul.mubr.msk.f32.vlgmr.msra.gmra.mxu1 %vm87_vm0, %v514_v14  ;;  %v44_v14 = vld [vmem:[%s1487_s2 + $0x60] sm:$0xff] }
 0x50a   :  { %612 = vmatprep.mubr.f32.mxu1 %v1283_v30  ;;  %777 = vmatpush1.xpose.msra.mxu1 %v79_v60 }
 0x50b   :  { %778 = vmatprep.subr.mxu1 %v78_v62 }
 0x50c   :  { %v515_v17 = vpop.trf.xlu0 }
 0x50d   :  { %1149 = vmatmul.mubr.msk.f32.gmra.mxu1 %vm87_vm0, %v515_v17 }
 0x50e   :  { %618 = vmatprep.mubr.f32.mxu1 %v1283_v30  ;;  %779 = vmatpush1.xpose.msra.mxu1 %v77_v63 }
 0x510   :  { %v516_v18 = vpop.trf.xlu0 }
 0x511   :  { %1150 = vmatmul.mubr.msk.f32.gmra.mxu1 %vm87_vm0, %v516_v18 }
 0x512   :  { %624 = vmatprep.mubr.f32.mxu1 %v1283_v30 }
 0x514   :  { %v517_v19 = vpop.trf.xlu0 }
 0x515   :  { %1151 = vmatmul.mubr.msk.f32.gmra.mxu1 %vm87_vm0, %v517_v19 }
 0x516   :  { %812 = vmatprep.mubr.f32.mxu1 %v1429_v21 }
 0x519   :  { %813 = vmatmul.mubr.f32.vlgmr.msra.gmra.mxu1 %v1433_v22 }
 0x51a   :  { %817 = vmatprep.mubr.f32.mxu1 %v1435_v24 }
 0x51d   :  { %818 = vmatmul.mubr.f32.gmra.mxu1 %v1439_v25 }
 0x5c9   :  { %v608_v26 = vpop.f32.mrf.mxu1 }
 0x5cb   :  { %v610_v27 = vpop.f32.mrf.mxu1 }
 0x5cd   :  { %v614_v28 = vpop.f32.mrf.mxu1 }
 0x5cf   :  { %v616_v29 = vpop.f32.mrf.mxu1 }
 0x5d1   :  { %v620_v31 = vpop.f32.mrf.mxu1 }
 0x5d2   :  { %v635_v43 = vmul.f32 %v620_v31, %v1387_v11  ;;  %v632_v11 = vmul.f32 %v610_v27, %v1396_v20  ;;  %v46_v20 = vld [vmem:[%s1487_s2 + $0x70] sm:$0xff] }
 0x5d3   :  { %v622_v32 = vpop.f32.mrf.mxu1 }
 0x5d4   :  { %v636_v37 = vmul.f32 %v622_v32, %v1383_v8  ;;  %v72_v8 = vld [vmem:[#allocation2 + $0xb8] sm:$0xff]  ;;  %v643_v49 = vadd.f32 %v635_v43, %v73_v46 }
 0x5d5   :  { %v626_v33 = vpop.f32.mrf.mxu1 }
 0x5d6   :  { %v637_v34 = vmul.f32 %v626_v33, %v1381_v7  ;;  %v634_v7 = vmul.f32 %v616_v29, %v1389_v12  ;;  %v644_v47 = vadd.f32 %v636_v37, %v74_v40  ;;  %v631_v12 = vmul.f32 %v608_v26, %v1399_v23 }
 0x5d7   :  { %v628_v36 = vpop.f32.mrf.mxu1 }
 0x5d8   :  { %v638_v39 = vmul.f32 %v628_v36, %v1385_v10  ;;  %v645_v44 = vadd.f32 %v637_v34, %v75_v38  ;;  %v633_v10 = vmul.f32 %v614_v28, %v1392_v16  ;;  %v642_v54 = vadd.f32 %v634_v7, %v72_v8  ;;  %v47_v16 = vld [vmem:[%s1487_s2 + $0x78] sm:$0xff] }
 0x5d9   :  { %v814_v41 = vpop.f32.mrf.mxu1  ;;  %v639_v51 = vadd.f32 %v631_v12, %v69_v52  ;;  %1182 = vmatprep.subr.mxu0 %v47_v16 }
 0x5da   :  { %v646_v42 = vadd.f32 %v638_v39, %v76_v35  ;;  %1154 = vmatmul.mubr.msk.f32.vlgmr.msra.gmra.mxu0 %vm823_vm3, %v814_v41  ;;  %v641_v55 = vadd.f32 %v633_v10, %v71_v53 }
 0x5db   :  { %v816_v45 = vpop.f32.mrf.mxu1  ;;  %900 = vmatprep.mubr.f32.mxu0 %v1283_v30  ;;  %v70_v30 = vld [vmem:[#allocation2 + $0xa8] sm:$0xff]  ;;  %1183 = vmatpush3.msra.mxu0 %v47_v16 }
 0x5dc   :  { %943 = vmatprep.subr.mxu1 %v646_v42  ;;  %v640_v56 = vadd.f32 %v632_v11, %v70_v30  ;;  %1184 = vmatprep.subr.mxu0 %v46_v20 }
 0x5dd   :  { %v819_v48 = vpop.f32.mrf.mxu1  ;;  %944 = vmatpush1.xpose.msra.mxu1 %v645_v44  ;;  %1185 = vmatpush3.msra.mxu0 %v46_v20 }
 0x5de   :  { %1155 = vmatmul.mubr.msk.f32.gmra.mxu0 %vm823_vm3, %v819_v48  ;;  %945 = vmatprep.subr.mxu1 %v644_v47 }
 0x5df   :  { %v821_v50 = vpop.f32.mrf.mxu1  ;;  %1186 = vmatprep.subr.mxu0 %v45_v13 }
 0x5e0   :  { %1187 = vmatpush3.msra.mxu0 %v45_v13 }
 0x5e1   :  { %946 = vmatpush1.xpose.msra.mxu1 %v643_v49  ;;  %1188 = vmatprep.subr.mxu0 %v44_v14  ;;  %v1158_v49 = vld [vmem:[%s1487_s2 + $0x80] ss:$0 sm:$0xff] }
 0x5e2   :  { %947 = vmatprep.subr.mxu1 %v642_v54  ;;  %1189 = vmatpush3.msra.mxu0 %v44_v14 }
 0x5e5   :  { %948 = vmatpush1.xpose.msra.mxu1 %v641_v55 }
 0x5e6   :  { %949 = vmatprep.subr.mxu1 %v640_v56 }
 0x5e9   :  { %950 = vmatpush1.xpose.msra.mxu1 %v639_v51 }
 0x69a   :  { %v896_v23 = vpop.f32.mrf.mxu0 }
 0x69b   :  { %v907_v57 = vmax.f32 %v896_v23, 1e-30 }
 0x69c   :  { %v898_v58 = vpop.f32.mrf.mxu0 }
 0x69d   :  { %v908_v59 = vmax.f32 %v898_v58, 1e-30  ;;  %1220 = vrcp.f32 %v907_v57 }
 0x69e   :  { %v902_v60 = vpop.f32.mrf.mxu0 }
 0x69f   :  { %1222 = vrcp.f32 %v908_v59  ;;  %v909_v61 = vmax.f32 %v902_v60, 1e-30 }
 0x6a0   :  { %v904_v62 = vpop.f32.mrf.mxu0 }
 0x6a1   :  { %v910_v63 = vmax.f32 %v904_v62, 1e-30  ;;  %1224 = vrcp.f32 %v909_v61 }
 0x6a3   :  { %1226 = vrcp.f32 %v910_v63 }
 0x6aa   :  { %v1221_v0 = vpop.eup %1220 }
 0x6ab   :  { %v915_v3 = vmul.f32 %v1221_v0, %v1433_v22 }
 0x6ac   :  { %v1223_v1 = vpop.eup %1222 }
 0x6ad   :  { %v916_v2 = vmul.f32 %v1223_v1, %v1429_v21 }
 0x6ae   :  { %v1225_v4 = vpop.eup %1224 }
 0x6af   :  { %983 = vmatprep.mubr.f32.mxu1 %v916_v2  ;;  %v917_v9 = vmul.f32 %v1225_v4, %v1439_v25 }
 0x6b0   :  { %v1227_v5 = vpop.eup %1226  ;;  %984 = vmatmul.mubr.f32.vlgmr.msra.gmra.mxu1 %v915_v3 }
 0x6b1   :  { %v918_v6 = vmul.f32 %v1227_v5, %v1435_v24 }
 0x6b3   :  { %988 = vmatprep.mubr.f32.mxu1 %v918_v6 }
 0x6b4   :  { %989 = vmatmul.mubr.f32.gmra.mxu1 %v917_v9 }
 0x770   :  { %v985_v15 = vpop.f32.mrf.mxu1 }
 0x771   :  { %1190 = vmatprep.mubr.msk.f32.mxu0 %vm87_vm0, %v985_v15 }
 0x772   :  { %v987_v17 = vpop.f32.mrf.mxu1 }
 0x774   :  { %v990_v18 = vpop.f32.mrf.mxu1 }
 0x775   :  { %1191 = vmatmul.mubr.msk.f32.vlgmr.msra.gmra.mxu0 %vm87_vm0, %v990_v18 }
 0x776   :  { %v992_v19 = vpop.f32.mrf.mxu1 }
 0x835   :  { %v1192_v21 = vpop.f32.mrf.mxu0 }
 0x836   :  { %v1078_v25 = vsel %vm87_vm0, %v1192_v21, -inf }
 0x837   :  { %v1066_v22 = vpop.f32.mrf.mxu0 }
 0x838   :  { %v1075_v24 = vsel %vm87_vm0, %v1066_v22, -inf }
 0x839   :  { %1076 = vmax.xlane.f32.xlu1 %v1075_v24 }
 0x83d   :  { %1079 = vmax.xlane.f32.xlu1 %v1078_v25 }
 0x8c2   :  { %v1077_v26 = vpop.xlane.xlu1 %1076 }
 0x8c3   :  { %1228 = vrcp.f32 %v1077_v26 }
 0x8c6   :  { %v1080_v27 = vpop.xlane.xlu1 %1079 }
 0x8c7   :  { %1230 = vrcp.f32 %v1080_v27 }
 0x8d0   :  { %v1229_v28 = vpop.eup %1228 }
 0x8d1   :  { %v1082_v29 = vmul.f32 %v1229_v28, %v1066_v22 }
 0x8d3   :  { %v1085_v31 = vsel %vm87_vm0, %v1082_v29, 0.0 }
 0x8d4   :  { %v1231_v32 = vpop.eup %1230  ;;  %1086 = vadd.xlane.f32.xlu1 %v1085_v31 }
 0x8d5   :  { %v1084_v33 = vmul.f32 %v1231_v32, %v1192_v21 }
 0x8d7   :  { %v1088_v34 = vsel %vm87_vm0, %v1084_v33, 0.0 }
 0x8d8   :  { %1089 = vadd.xlane.f32.xlu1 %v1088_v34 }
 0x95d   :  { %v1087_v35 = vpop.xlane.xlu1 %1086 }
 0x95e   :  { %v1091_v36 = vmul.f32 0.03125, %v1087_v35 }
 0x960   :  { %v1093_v37 = vsub.f32 %v1082_v29, %v1091_v36 }
 0x961   :  { %v1090_v38 = vpop.xlane.xlu1 %1089 }
 0x962   :  { %v1092_v39 = vmul.f32 0.03125, %v1090_v38  ;;  %v1095_v40 = vmul.f32 %v1093_v37, %v1093_v37 }
 0x964   :  { %v1094_v41 = vsub.f32 %v1084_v33, %v1092_v39  ;;  %v1097_v42 = vsel %vm87_vm0, %v1095_v40, 0.0 }
 0x965   :  { %1098 = vadd.xlane.f32.xlu1 %v1097_v42 }
 0x966   :  { %v1096_v43 = vmul.f32 %v1094_v41, %v1094_v41 }
 0x968   :  { %v1100_v44 = vsel %vm87_vm0, %v1096_v43, 0.0 }
 0x969   :  { %1101 = vadd.xlane.f32.xlu1 %v1100_v44 }
 0x9ee   :  { %v1099_v45 = vpop.xlane.xlu1 %1098 }
 0x9ef   :  { %v1103_v7 = vmul.f32 0.03125, %v1099_v45 }
 0x9f1   :  { %v1105_v46 = vadd.f32 1e-05, %v1103_v7 }
 0x9f2   :  { %v1102_v47 = vpop.xlane.xlu1 %1101 }
 0x9f3   :  { %1232 = vrsqrt.f32 %v1105_v46  ;;  %v1104_v8 = vmul.f32 0.03125, %v1102_v47 }
 0x9f5   :  { %v1106_v48 = vadd.f32 1e-05, %v1104_v8 }
 0x9f7   :  { %1234 = vrsqrt.f32 %v1106_v48 }
 0xa00   :  { %v1233_v10 = vpop.eup %1232 }
 0xa01   :  { %v1109_v50 = vmul.f32 %v1233_v10, %v1093_v37 }
 0xa03   :  { %v1115_v11 = vmul.f32 %v1158_v49, %v1109_v50 }
 0xa04   :  { %v1235_v53 = vpop.eup %1234 }
 0xa05   :  { %v1110_v54 = vmul.f32 %v1235_v53, %v1094_v41  ;;  %1117 = vst.msk [vmem:[#allocation5] sm:$0xff] %vm87_vm0, %v1115_v11 }
 0xa07   :  { %v1116_v30 = vmul.f32 %v1158_v49, %v1110_v54 }
 0xa09   :  { %1118 = vst.msk [vmem:[#allocation5 + $0x8] sm:$0xff] %vm87_vm0, %v1116_v30 }
 0xa0a   :  { %1267 = shalt.err (!%p1264_p9)
}
 0xa0b   :  { %s1285_s2 = smov 128   ;;  %s1286_s10 = smov 8  }
 0xa0c   :  { %1130 = dma.vmem_to_hbm [thread:$0]  %s1125_s8, 256, %s1489_s4, [#allocation4], %s1285_s2, %s1285_s2, %s1286_s10  }
 0xa0d   :  { %1278 = dma.done.wait [#allocation4], 256  }
 0xa0e   :  { %1279 = vsyncadd [#allocation4], 4294967040 }
 0xa0f   :  { %1134 = vsyncpa [#allocation3], 1 }
 0xa10   :  { %1135 = vsyncpa [#allocation4], 1 }

</bundles_post_ra>
